<compile_context>
chip_gen: v5e
topology: v5e:2x2
jax: 0.10.0
libtpu: 0.0.40
codegen_flags: <defaults>
</compile_context>

<pallas_src>
import functools

import jax
import jax.numpy as jnp
from jax.experimental import pallas as pl
from jax.experimental.pallas import tpu as pltpu


def _path_encoder_kernel(pd_ref, w_ref, dist_ref, o_ref, *, max_len):
    # pd_ref:   (tm, K)   path features for tm (b,x,y) pairs
    # w_ref:    (K, H)    edge embedding, K = L*d (resident across the grid)
    # dist_ref: (tm, 1)   shortest distances (f32)
    # o_ref:    (tm, H)   attention bias (f32)
    acc = jnp.dot(pd_ref[...], w_ref[...], preferred_element_type=jnp.float32)
    denom = jnp.clip(dist_ref[...].astype(jnp.float32), 1.0, float(max_len))
    # approx=False keeps full f32 accuracy; the kernel is HBM-bound so the
    # iterative reciprocal is not on the critical path.
    o_ref[...] = acc * pl.reciprocal(denom, approx=False)


def _choose_tm(M, K, H, itemsize, *, tm_max=4096, min_steps=8,
               vmem_budget_bytes=24 << 20):
    """Pick the row tile: big for bandwidth, but >= min_steps grid steps and
    double-buffered tiles within a conservative VMEM budget."""
    # Double-buffered pd + dist + out tiles per row (out is always f32).
    bytes_per_row = 2 * (K * itemsize + 1 * 4 + H * 4)
    tm_fit = max(128, vmem_budget_bytes // max(1, bytes_per_row))
    tm = min(tm_max, tm_fit, max(128, pl.cdiv(M, min_steps)))
    tm = max(128, (tm // 128) * 128)  # multiple of 128 rows (sublane-friendly)
    return int(tm)


def path_encoder_forward(dist, path_data, embedding_weight, *, max_len, num_heads,
                         tm=None):
    """
    dist:             (B, N, N)              any real/int dtype
    path_data:        (B, N, N, L, d)        float32 or bfloat16
    embedding_weight: (max_len*num_heads, d) same family as path_data
    returns:          (B, N, N, num_heads)   float32
    """
    B, N, _, L, d = path_data.shape
    assert L == max_len
    H = num_heads
    K = L * d
    M = B * N * N

    # Glue (plain JAX): reshape to matmul-friendly layout. No forced upcast —
    # the dot accumulates in f32 regardless of the input dtype.
    pd2 = path_data.reshape(M, K)
    # einsum 'bxyld,lhd->bxyh' == (M, L*d) @ (L*d, H) with W2[l*d + dd, h] = W[l, h, dd]
    w2 = jnp.transpose(
        embedding_weight.reshape(max_len, num_heads, d), (0, 2, 1)
    ).reshape(K, H)
    if w2.dtype != pd2.dtype:
        w2 = w2.astype(pd2.dtype)
    dist2 = dist.reshape(M, 1).astype(jnp.float32)

    if tm is None:
        tm = _choose_tm(M, K, H, jnp.dtype(pd2.dtype).itemsize)

    # Ragged last block instead of jnp.pad: avoids an extra full HBM copy of
    # the (M, K) slab. OOB rows in the last block never reach HBM output.
    grid = (pl.cdiv(M, tm),)

    itemsize = jnp.dtype(pd2.dtype).itemsize
    cost = pl.CostEstimate(
        flops=2 * M * K * H,
        transcendentals=0,
        bytes_accessed=M * K * itemsize + K * H * itemsize + M * 4 + M * H * 4,
    )

    kernel = functools.partial(_path_encoder_kernel, max_len=max_len)

    out = pl.pallas_call(
        kernel,
        out_shape=jax.ShapeDtypeStruct((M, H), jnp.float32),
        grid_spec=pltpu.PrefetchScalarGridSpec(
            num_scalar_prefetch=0,
            grid=grid,
            in_specs=[
                pl.BlockSpec((tm, K), lambda i: (i, 0)),   # path_data tile
                pl.BlockSpec((K, H), lambda i: (0, 0)),    # embedding (resident)
                pl.BlockSpec((tm, 1), lambda i: (i, 0)),   # distances tile
            ],
            out_specs=pl.BlockSpec((tm, H), lambda i: (i, 0)),
        ),
        compiler_params=pltpu.CompilerParams(
            dimension_semantics=("parallel",),
            vmem_limit_bytes=32 << 20,   # safe on v5e/v6e/v7x; tm capped to ~24 MiB use
        ),
        cost_estimate=cost,
    )(pd2, w2, dist2)

    return out.reshape(B, N, N, H)


def path_encoder_reference(dist, path_data, embedding_weight, *, max_len, num_heads):
    """Pure-JAX reference mirroring the PyTorch forward exactly."""
    L = max_len
    H = num_heads
    d = path_data.shape[-1]
    sd = jnp.clip(dist.astype(jnp.float32), 1.0, float(max_len))          # (B,N,N)
    W = embedding_weight.reshape(L, H, d)
    enc = jnp.einsum("bxyld,lhd->bxyh", path_data.astype(jnp.float32),
                     W.astype(jnp.float32))                               # (B,N,N,H)
    return enc / sd[..., None]


if __name__ == "__main__":
    # Small, deterministic example: B=2 graphs, N=16 nodes, path length L=4,
    # edge feature dim d=16, H=8 heads.
    B, N = 2, 16
    max_len, feat_dim, num_heads = 4, 16, 8

    key = jax.random.PRNGKey(0)
    k1, k2, k3 = jax.random.split(key, 3)

    # Deterministic "trained" embedding table: (max_len*num_heads, feat_dim)
    embedding_weight = jax.random.normal(
        k1, (max_len * num_heads, feat_dim), dtype=jnp.float32)

    # Path edge-feature data (zero padding would come from the graph pipeline;
    # random values are fine for exercising the kernel).
    path_data = jax.random.normal(
        k2, (B, N, N, max_len, feat_dim), dtype=jnp.float32)

    # Shortest-path distances, including 0 (self) and -1 (unreachable) like DGL.
    dist = jax.random.randint(k3, (B, N, N), minval=-1, maxval=7).astype(jnp.int32)

    out = path_encoder_forward(
        dist, path_data, embedding_weight,
        max_len=max_len, num_heads=num_heads)
    out = jax.block_until_ready(out)

    ref = path_encoder_reference(
        dist, path_data, embedding_weight,
        max_len=max_len, num_heads=num_heads)

    assert out.shape == (B, N, N, num_heads), out.shape
    assert jnp.allclose(out, ref, atol=1e-5, rtol=1e-5), float(
        jnp.max(jnp.abs(out - ref)))

    print("KERNEL_OK")
</pallas_src>

<mosaic_0001>
module attributes {stable_mosaic.version = 11 : i64} {
  func.func @_path_encoder_kernel(%arg0: i32, %arg1: memref<128x64xf32, #tpu.memory_space<vmem>>, %arg2: memref<64x8xf32, #tpu.memory_space<vmem>>, %arg3: memref<128x1xf32, #tpu.memory_space<vmem>>, %arg4: memref<128x8xf32, #tpu.memory_space<vmem>>) attributes {dimension_semantics = [#tpu.dimension_semantics<parallel>], iteration_bounds = array<i64: 4>, scalar_prefetch = 0 : i64, scratch_operands = 0 : i64, tpu.core_type = #tpu.core_type<tc>, window_params = [{transform_indices = @transform_0, window_bounds = array<i64: 128, 64>}, {pipeline_mode = #tpu.pipeline_mode<synchronous>, transform_indices = @transform_1, window_bounds = array<i64: 64, 8>}, {transform_indices = @transform_2, window_bounds = array<i64: 128, 1>}, {transform_indices = @transform_3, window_bounds = array<i64: 128, 8>}]} {
    %c0 = arith.constant 0 : index
    %c0_0 = arith.constant 0 : index
    %0 = vector.load %arg1[%c0, %c0_0] : memref<128x64xf32, #tpu.memory_space<vmem>>, vector<128x64xf32>
    %c0_1 = arith.constant 0 : index
    %c0_2 = arith.constant 0 : index
    %1 = vector.load %arg2[%c0_1, %c0_2] : memref<64x8xf32, #tpu.memory_space<vmem>>, vector<64x8xf32>
    %cst = arith.constant dense<0.000000e+00> : vector<128x8xf32>
    %2 = tpu.matmul %0, %1, %cst {dimension_numbers = #tpu.dot_dimension_numbers<[1], [0], [0], [1], [0, 0, 1, 1], [], []>} : vector<128x64xf32>, vector<64x8xf32>, vector<128x8xf32> -> vector<128x8xf32>
    %c0_3 = arith.constant 0 : index
    %c0_4 = arith.constant 0 : index
    %3 = vector.load %arg3[%c0_3, %c0_4] : memref<128x1xf32, #tpu.memory_space<vmem>>, vector<128x1xf32>
    %cst_5 = arith.constant 1.000000e+00 : f32
    %cst_6 = arith.constant 4.000000e+00 : f32
    %4 = vector.broadcast %cst_5 : f32 to vector<128x1xf32>
    %5 = arith.maximumf %4, %3 : vector<128x1xf32>
    %6 = vector.broadcast %cst_6 : f32 to vector<128x1xf32>
    %7 = arith.minimumf %6, %5 : vector<128x1xf32>
    %8 = tpu.reciprocal %7 : vector<128x1xf32> -> vector<128x1xf32>
    %9 = vector.broadcast %8 : vector<128x1xf32> to vector<128x8xf32>
    %10 = arith.mulf %2, %9 : vector<128x8xf32>
    %c0_7 = arith.constant 0 : index
    %c0_8 = arith.constant 0 : index
    %11 = vector.load %arg4[%c0_7, %c0_8] : memref<128x8xf32, #tpu.memory_space<vmem>>, vector<128x8xf32>
    tpu.vector_store %arg4[%c0_7, %c0_8], %10 {strides = array<i32>} : memref<128x8xf32, #tpu.memory_space<vmem>>, vector<128x8xf32>,
    return
  }
  func.func @transform_0(%arg0: i32) -> (i32, i32) {
    %c0_i32 = arith.constant 0 : i32
    %c0_i32_0 = arith.constant 0 : i32
    return %arg0, %c0_i32 : i32, i32
  }
  func.func @transform_1(%arg0: i32) -> (i32, i32) {
    %c0_i32 = arith.constant 0 : i32
    %c0_i32_0 = arith.constant 0 : i32
    %c0_i32_1 = arith.constant 0 : i32
    return %c0_i32, %c0_i32_0 : i32, i32
  }
  func.func @transform_2(%arg0: i32) -> (i32, i32) {
    %c0_i32 = arith.constant 0 : i32
    %c0_i32_0 = arith.constant 0 : i32
    return %arg0, %c0_i32 : i32, i32
  }
  func.func @transform_3(%arg0: i32) -> (i32, i32) {
    %c0_i32 = arith.constant 0 : i32
    %c0_i32_0 = arith.constant 0 : i32
    return %arg0, %c0_i32 : i32, i32
  }
}

</mosaic_0001>

<bundles_post_ra>
// kernel: tpu_custom_call.1
= control target key start
LH: loop header
LB: loop body
LE: loop exit
PB: predicated region body
PF: predicated region fallthrough
CT: control target
= control target key end

     0   :  { %s913_s12 = smov 0   ;;  %s1346_s0 = inlined_call_operand.vmem [shape: f32[512,64], index: 0, kind: input, shape index: {}]   ;;  %s1347_s1 = inlined_call_operand.vmem [shape: f32[64,8], index: 1, kind: input, shape index: {}]   ;;  %s1348_s2 = inlined_call_operand.vmem [shape: f32[512,1], index: 2, kind: input, shape index: {}]   ;;  %s1349_s3 = inlined_call_operand.vmem [shape: f32[512,8], index: 3, kind: output, shape index: {}]  }
   0x1 LB: > { %s787_s13 = sadd.s32 4294967295, %s890_s12   ;;  %p791_p0 = scmp.ge.s32.totalorder %s890_s12, 1  ;;  %s890_s12 = sphi %s913_s12, %s13_s12  }
   0x2   : > { %p149_p1 = scmp.lt.s32.totalorder %s890_s12, 5 }
   0x4   : > { %p150_p2 = pnand %p791_p0, %p149_p1 }
   0x5   : > { %s792_s18 = sshll.u32 (!%p150_p2), %s787_s13, 4 }
   0x6   : > { %153 = sbr.rel (%p150_p2) target bundleno = 205 (0xcd), region = 32  ;;  %p179_p3 = scmp.lt.s32.totalorder (!%p150_p2), %s792_s18, 63 }
   0xb   : > { %v219_v0 = vld [vmem:[%s1347_s1 + $0x38] sm:$0xff]  ;;  %v218_v1 = vld [vmem:[%s1347_s1 + $0x30] sm:$0xff]  ;;  %v217_v2 = vld [vmem:[%s1347_s1 + $0x28] sm:$0xff]  ;;  %s1395_s18 = smov (!%p179_p3, %s792_s18), 63  ;;  %vm220_vm0 = vcmask 523264   ;;  %v892_v35 = vmov 0  }
   0xc   : > { %277 = vmatpush.msra.mxu0 %v219_v0  ;;  %816 = vmatpush.msra.mxu1 %v219_v0  ;;  %v216_v3 = vld [vmem:[%s1347_s1 + $0x20] sm:$0xff]  ;;  %s933_s23 = sshll.u32 %s1395_s18, 3  ;;  %v215_v4 = vld [vmem:[%s1347_s1 + $0x18] sm:$0xff]  ;;  %v214_v5 = vld [vmem:[%s1347_s1 + $0x10] sm:$0xff] }
   0xd   : > { %817 = vmatpush.msra.mxu2 %v219_v0  ;;  %818 = vmatpush.msra.mxu3 %v219_v0  ;;  %s942_s28 = scalar_lea.vmem %s1348_s2, %s933_s23  ;;  %v213_v7 = vld [vmem:[%s1347_s1 + $0x8] sm:$0xff]  ;;  %s957_s8 = scalar_lea.vmem %s1346_s0, %s933_s23  ;;  %v212_v13 = vld [vmem:[%s1347_s1] sm:$0xff] }
   0xe   : > { %278 = vmatpush.msra.mxu0 %v218_v1  ;;  %819 = vmatpush.msra.mxu1 %v218_v1  ;;  %v338_v6 = vld [vmem:[%s942_s28 + $0x20] sm:$0xff]  ;;  %v336_v9 = vld [vmem:[%s942_s28 + $0x10] sm:$0xff]  ;;  %v339_v15 = vld [vmem:[%s942_s28 + $0x28] sm:$0xff]  ;;  %s1309_s14 = scalar_lea.vmem %s1349_s3, %s933_s23 }
   0xf   : > { %820 = vmatpush.msra.mxu2 %v218_v1  ;;  %821 = vmatpush.msra.mxu3 %v218_v1  ;;  %v354_v8 = vmax.f32 %v338_v6, 1.0  ;;  %v334_v10 = vld [vmem:[%s942_s28] sm:$0xff]  ;;  %v352_v11 = vmax.f32 %v336_v9, 1.0  ;;  %v337_v16 = vld [vmem:[%s942_s28 + $0x18] sm:$0xff]  ;;  %v355_v21 = vmax.f32 %v339_v15, 1.0  ;;  %v335_v31 = vld [vmem:[%s942_s28 + $0x8] sm:$0xff] }
  0x10   : > { %279 = vmatpush.msra.mxu0 %v217_v2  ;;  %822 = vmatpush.msra.mxu1 %v217_v2  ;;  %v350_v12 = vmax.f32 %v334_v10, 1.0  ;;  %v196_v19 = vld [vmem:[%s957_s8] sm:$0xff]  ;;  %v353_v22 = vmax.f32 %v337_v16, 1.0  ;;  %v341_v38 = vld [vmem:[%s942_s28 + $0x38] sm:$0xff]  ;;  %v1006_v39 = vld [vmem:[%s942_s28 + $0x30] sm:$0xff]  ;;  %v351_v43 = vmax.f32 %v335_v31, 1.0 }
  0x11   : > { %823 = vmatpush.msra.mxu2 %v217_v2  ;;  %824 = vmatpush.msra.mxu3 %v217_v2  ;;  %v962_v14 = vmin.f32 %v354_v8, 4.0  ;;  %v966_v17 = vmin.f32 %v352_v11, 4.0  ;;  %v200_v20 = vld [vmem:[%s957_s8 + $0x20] sm:$0xff]  ;;  %v992_v33 = vmin.f32 %v355_v21, 4.0  ;;  %v197_v50 = vld [vmem:[%s957_s8 + $0x8] sm:$0xff]  ;;  %v357_v54 = vmax.f32 %v341_v38, 1.0 }
  0x12   : > { %280 = vmatpush.msra.mxu0 %v216_v3  ;;  %825 = vmatpush.msra.mxu1 %v216_v3  ;;  %v968_v18 = vmin.f32 %v350_v12, 4.0  ;;  %v204_v23 = vld [vmem:[%s957_s8 + $0x40] sm:$0xff]  ;;  %v994_v34 = vmin.f32 %v353_v22, 4.0  ;;  %v201_v51 = vld [vmem:[%s957_s8 + $0x28] sm:$0xff]  ;;  %v356_v55 = vmax.f32 %v1006_v39, 1.0  ;;  %v1032_v62 = vmin.f32 %v351_v43, 4.0 }
  0x13   : > { %826 = vmatpush.msra.mxu2 %v216_v3  ;;  %827 = vmatpush.msra.mxu3 %v216_v3  ;;  %852 = vrcp.f32 %v962_v14  ;;  %v208_v24 = vld [vmem:[%s957_s8 + $0x60] sm:$0xff]  ;;  %v447_v25 = vand.u32 2147483647, %v962_v14  ;;  %v449_v26 = vand.u32 2147483648, %v962_v14  ;;  %v419_v27 = vand.u32 2147483647, %v966_v17 }
  0x14   : > { %281 = vmatpush.msra.mxu0 %v215_v4  ;;  %828 = vmatpush.msra.mxu1 %v215_v4  ;;  %854 = vrcp.f32 %v966_v17  ;;  %v421_v28 = vand.u32 2147483648, %v966_v17  ;;  %v391_v29 = vand.u32 2147483647, %v968_v18  ;;  %v393_v30 = vand.u32 2147483648, %v968_v18  ;;  %v987_v32 = vld [vmem:[%s942_s28 + $0x40] sm:$0xff]  ;;  %v205_v56 = vld [vmem:[%s957_s8 + $0x48] sm:$0xff] }
  0x15   : > { %829 = vmatpush.msra.mxu2 %v215_v4  ;;  %830 = vmatpush.msra.mxu3 %v215_v4  ;;  %856 = vrcp.f32 %v968_v18  ;;  %vm443_vm1 = vweird.f32 %v962_v14  ;;  %vm996_vm2 = vcmp.eq.f32.partialorder %v447_v25, 8.507059e+37  ;;  %v1000_v37 = vor.u32 1.1754944e-38, %v449_v26  ;;  %v209_v57 = vld [vmem:[%s957_s8 + $0x68] sm:$0xff]  ;;  %v198_v22 = vld [vmem:[%s957_s8 + $0x10] sm:$0xff]  ;;  %v211_v2 = vld [vmem:[%s957_s8 + $0x78] sm:$0xff] }
  0x16   : > { %282 = vmatpush.msra.mxu0 %v214_v5  ;;  %831 = vmatpush.msra.mxu1 %v214_v5  ;;  %vm415_vm3 = vweird.f32 %v966_v17  ;;  %vm387_vm4 = vweird.f32 %v968_v18  ;;  %vm1008_vm5 = vcmp.eq.f32.partialorder %v419_v27, 8.507059e+37  ;;  %v422_v42 = vor.u32 1.1754944e-38, %v421_v28  ;;  %v202_v26 = vld [vmem:[%s957_s8 + $0x30] sm:$0xff] }
  0x17   : > { %832 = vmatpush.msra.mxu2 %v214_v5  ;;  %833 = vmatpush.msra.mxu3 %v214_v5  ;;  %858 = vrcp.f32 %v992_v33  ;;  %v358_v44 = vmax.f32 %v987_v32, 1.0  ;;  %vm1015_vm6 = vcmp.eq.f32.partialorder %v391_v29, 8.507059e+37  ;;  %v1019_v48 = vor.u32 1.1754944e-38, %v393_v30  ;;  %v206_v27 = vld [vmem:[%s957_s8 + $0x50] sm:$0xff] }
  0x18   : > { %283 = vmatpush.msra.mxu0 %v213_v7  ;;  %834 = vmatpush.msra.mxu1 %v213_v7  ;;  %860 = vrcp.f32 %v994_v34  ;;  %v463_v53 = vand.u32 2147483648, %v992_v33  ;;  %vm457_vm8 = vweird.f32 %v992_v33  ;;  %v461_v61 = vand.u32 2147483647, %v992_v33  ;;  %v210_v32 = vld [vmem:[%s957_s8 + $0x70] sm:$0xff] }
  0x19   : > { %835 = vmatpush.msra.mxu2 %v213_v7  ;;  %836 = vmatpush.msra.mxu3 %v213_v7  ;;  %v853_v40 = vpop.eup %852  ;;  %vm429_vm11 = vweird.f32 %v994_v34  ;;  %v433_v5 = vand.u32 2147483647, %v994_v34  ;;  %862 = vrcp.f32 %v1032_v62  ;;  %v435_v11 = vand.u32 2147483648, %v994_v34 }
  0x1a   : > { %284 = vmatpush.msra.mxu0 %v212_v13  ;;  %837 = vmatpush.msra.mxu1 %v212_v13  ;;  %v855_v45 = vpop.eup %854  ;;  %v439_v46 = vmul.f32 %v853_v40, %v962_v14  ;;  %vm444_vm7 = vweird.f32 %v853_v40  ;;  %v464_v4 = vor.u32 1.1754944e-38, %v463_v53  ;;  %v1068_v15 = vmin.f32 %v358_v44, 4.0  ;;  %v345_v44 = vld [vmem:[%s942_s28 + $0x58] sm:$0xff]  ;;  %v343_v53 = vld [vmem:[%s942_s28 + $0x48] sm:$0xff] }
  0x1b   : > { %838 = vmatpush.msra.mxu2 %v212_v13  ;;  %839 = vmatpush.msra.mxu3 %v212_v13  ;;  %v857_v49 = vpop.eup %856  ;;  %v411_v52 = vmul.f32 %v855_v45, %v966_v17  ;;  %vm416_vm9 = vweird.f32 %v855_v45  ;;  %vm1044_vm12 = vmor %vm443_vm1, %vm444_vm7  ;;  %v1070_v16 = vmin.f32 %v357_v54, 4.0  ;;  %v405_v29 = vand.u32 2147483647, %v1032_v62 }
  0x1c   : > { %798 = vmatmul.msk.f32.vlgmr.msra.gmra.mxu0 %vm220_vm0, %v196_v19  ;;  %802 = vmatmul.msk.f32.vlgmr.msra.gmra.mxu1 %vm220_vm0, %v200_v20  ;;  %v440_v58 = vsub.f32 1.0, %v439_v46  ;;  %v383_v59 = vmul.f32 %v857_v49, %v968_v18  ;;  %vm388_vm10 = vweird.f32 %v857_v49  ;;  %vm1053_vm13 = vmor %vm415_vm3, %vm416_vm9  ;;  %864 = vrcp.f32 %v1068_v15 }
  0x1d   : > { %806 = vmatmul.msk.f32.vlgmr.msra.gmra.mxu2 %vm220_vm0, %v204_v23  ;;  %810 = vmatmul.msk.f32.vlgmr.msra.gmra.mxu3 %vm220_vm0, %v208_v24  ;;  %v412_v60 = vsub.f32 1.0, %v411_v52  ;;  %v1037_v1 = vpop.eup %858  ;;  %vm1063_vm14 = vmor %vm387_vm4, %vm388_vm10  ;;  %vm462_vm3 = vcmp.eq.f32.partialorder %v461_v61, 8.507059e+37  ;;  %866 = vrcp.f32 %v1070_v16  ;;  %vm499_vm9 = vweird.f32 %v1068_v15  ;;  %v344_v52 = vld [vmem:[%s942_s28 + $0x50] sm:$0xff]  ;;  %v207_v61 = vld [vmem:[%s957_s8 + $0x58] sm:$0xff] }
  0x1e   : > { %851 = vset.pattern.permute.xlu2 %v892_v35  ;;  %850 = vset.pattern.permute.xlu1 %v892_v35  ;;  %v441_v63 = vmul.f32 %v853_v40, %v440_v58  ;;  %v384_v0 = vsub.f32 1.0, %v383_v59  ;;  %v861_v6 = vpop.eup %860  ;;  %v453_v10 = vmul.f32 %v1037_v1, %v992_v33  ;;  %vm458_vm15 = vweird.f32 %v1037_v1 }
  0x1f   : > { %849 = vset.pattern.permute.xlu0 %v892_v35  ;;  %v413_v3 = vmul.f32 %v855_v45, %v412_v60  ;;  %v425_v14 = vmul.f32 %v861_v6, %v994_v34  ;;  %vm430_vm1 = vweird.f32 %v861_v6  ;;  %v1089_v30 = vpop.eup %862  ;;  %v503_v58 = vand.u32 2147483647, %v1068_v15 }
  0x20   : > { %v442_v7 = vadd.f32 %v853_v40, %v441_v63  ;;  %v385_v9 = vmul.f32 %v857_v49, %v384_v0  ;;  %v454_v20 = vsub.f32 1.0, %v453_v10  ;;  %vm1110_vm4 = vmor %vm429_vm11, %vm430_vm1  ;;  %v397_v41 = vmul.f32 %v1089_v30, %v1032_v62 }
  0x21   : > { %v414_v12 = vadd.f32 %v855_v45, %v413_v3  ;;  %v426_v23 = vsub.f32 1.0, %v425_v14  ;;  %vm402_vm7 = vweird.f32 %v1089_v30  ;;  %v505_v59 = vand.u32 2147483648, %v1068_v15 }
  0x22   : > { %v446_v17 = vsel %vm1044_vm12, %v853_v40, %v442_v7  ;;  %v386_v19 = vadd.f32 %v857_v49, %v385_v9  ;;  %v455_v28 = vmul.f32 %v1037_v1, %v454_v20  ;;  %v436_v40 = vor.u32 1.1754944e-38, %v435_v11  ;;  %v865_v54 = vpop.eup %864 }
  0x23   : > { %v451_v18 = vsel %vm996_vm2, %v1000_v37, %v446_v17  ;;  %v418_v21 = vsel %vm1053_vm13, %v855_v45, %v414_v12  ;;  %vm1099_vm2 = vmor %vm457_vm8, %vm458_vm15  ;;  %v427_v36 = vmul.f32 %v861_v6, %v426_v23  ;;  %v407_v37 = vand.u32 2147483648, %v1032_v62  ;;  %v867_v0 = vpop.eup %866 }
  0x24   : > { %799 = vmatmul.msk.f32.gmra.mxu0 %vm220_vm0, %v197_v50  ;;  %803 = vmatmul.msk.f32.gmra.mxu1 %vm220_vm0, %v201_v51  ;;  %v423_v24 = vsel %vm1008_vm5, %v422_v42, %v418_v21  ;;  %v390_v25 = vsel %vm1063_vm14, %v857_v49, %v386_v19  ;;  %v456_v38 = vadd.f32 %v1037_v1, %v455_v28  ;;  %vm434_vm5 = vcmp.eq.f32.partialorder %v433_v5, 8.507059e+37  ;;  %v348_v21 = vld [vmem:[%s942_s28 + $0x70] sm:$0xff] }
  0x25   : > { %807 = vmatmul.msk.f32.gmra.mxu2 %vm220_vm0, %v205_v56  ;;  %811 = vmatmul.msk.f32.gmra.mxu3 %vm220_vm0, %v209_v57  ;;  %v395_v31 = vsel %vm1015_vm6, %v1019_v48, %v390_v25  ;;  %v428_v42 = vadd.f32 %v861_v6, %v427_v36  ;;  %v398_v43 = vsub.f32 1.0, %v397_v41  ;;  %vm401_vm6 = vweird.f32 %v1032_v62  ;;  %v199_v57 = vld [vmem:[%s957_s8 + $0x18] sm:$0xff] }
  0x26   : > { %628 = vperm.xlu2 %851, %v451_v18   ;;  %618 = vperm.xlu1 %850, %v423_v24   ;;  %v460_v34 = vsel %vm1099_vm2, %v1037_v1, %v456_v38  ;;  %vm1128_vm8 = vcmp.eq.f32.partialorder %v405_v29, 8.507059e+37  ;;  %v408_v48 = vor.u32 1.1754944e-38, %v407_v37  ;;  %v1136_v51 = vmin.f32 %v356_v55, 4.0  ;;  %vm1140_vm10 = vmor %vm401_vm6, %vm402_vm7  ;;  %v203_v55 = vld [vmem:[%s957_s8 + $0x38] sm:$0xff] }
  0x27   : > { %608 = vperm.xlu0 %849, %v395_v31   ;;  %v465_v45 = vsel %vm462_vm3, %v464_v4, %v460_v34  ;;  %v432_v46 = vsel %vm1110_vm4, %v861_v6, %v428_v42  ;;  %v399_v50 = vmul.f32 %v1089_v30, %v398_v43  ;;  %vm485_vm11 = vweird.f32 %v1070_v16 }
  0x28   : > { %v437_v49 = vsel %vm434_vm5, %v436_v40, %v432_v46  ;;  %v361_v60 = vmax.f32 %v345_v44, 1.0  ;;  %v495_v62 = vmul.f32 %v865_v54, %v1068_v15  ;;  %v489_v63 = vand.u32 2147483647, %v1070_v16 }
  0x29   : > { %v400_v39 = vadd.f32 %v1089_v30, %v399_v50  ;;  %868 = vrcp.f32 %v1136_v51  ;;  %v491_v1 = vand.u32 2147483648, %v1070_v16  ;;  %v360_v4 = vmax.f32 %v344_v52, 1.0 }
  0x2a   : > { %v1156_v3 = vmin.f32 %v361_v60, 4.0  ;;  %v359_v5 = vmax.f32 %v343_v53, 1.0  ;;  %v496_v7 = vsub.f32 1.0, %v495_v62  ;;  %vm500_vm12 = vweird.f32 %v865_v54 }
  0x2b   : > { %v404_v6 = vsel %vm1140_vm10, %v1089_v30, %v400_v39  ;;  %v481_v8 = vmul.f32 %v867_v0, %v1070_v16  ;;  %vm1167_vm13 = vcmp.eq.f32.partialorder %v503_v58, 8.507059e+37  ;;  %v506_v11 = vor.u32 1.1754944e-38, %v505_v59  ;;  %vm1179_vm1 = vmor %vm499_vm9, %vm500_vm12  ;;  %v349_v58 = vld [vmem:[%s942_s28 + $0x78] sm:$0xff] }
  0x2c   : > { %800 = vmatmul.msk.f32.gmra.mxu0 %vm220_vm0, %v198_v22  ;;  %804 = vmatmul.msk.f32.gmra.mxu1 %vm220_vm0, %v202_v26  ;;  %v409_v9 = vsel %vm1128_vm8, %v408_v48, %v404_v6  ;;  %870 = vrcp.f32 %v1156_v3  ;;  %v497_v12 = vmul.f32 %v865_v54, %v496_v7  ;;  %vm486_vm14 = vweird.f32 %v867_v0  ;;  %v347_v22 = vld [vmem:[%s942_s28 + $0x68] sm:$0xff] }
  0x2d   : > { %808 = vmatmul.msk.f32.gmra.mxu2 %vm220_vm0, %v206_v27  ;;  %812 = vmatmul.msk.f32.gmra.mxu3 %vm220_vm0, %v210_v32  ;;  %v482_v13 = vsub.f32 1.0, %v481_v8  ;;  %vm1172_vm15 = vcmp.eq.f32.partialorder %v489_v63, 8.507059e+37  ;;  %v492_v19 = vor.u32 1.1754944e-38, %v491_v1  ;;  %vm471_vm2 = vweird.f32 %v1136_v51 }
  0x2e   : > { %633 = vperm.xlu2 %851, %v465_v45   ;;  %623 = vperm.xlu1 %850, %v437_v49   ;;  %v1184_v20 = vmin.f32 %v360_v4, 4.0  ;;  %v1186_v18 = vmin.f32 %v359_v5, 4.0  ;;  %v498_v24 = vadd.f32 %v865_v54, %v497_v12  ;;  %v475_v26 = vand.u32 2147483647, %v1136_v51  ;;  %v346_v49 = vld [vmem:[%s942_s28 + $0x60] sm:$0xff] }
  0x2f   : > { %613 = vperm.xlu0 %849, %v409_v9   ;;  %v869_v23 = vpop.eup %868  ;;  %v483_v25 = vmul.f32 %v867_v0, %v482_v13  ;;  %v477_v15 = vand.u32 2147483648, %v1136_v51  ;;  %v545_v29 = vand.u32 2147483647, %v1156_v3  ;;  %v547_v30 = vand.u32 2147483648, %v1156_v3 }
  0x30   : > { %v467_v28 = vmul.f32 %v869_v23, %v1136_v51  ;;  %872 = vrcp.f32 %v1184_v20  ;;  %v502_v31 = vsel %vm1179_vm1, %v865_v54, %v498_v24  ;;  %v364_v35 = vmax.f32 %v348_v21, 1.0 }
  0x31   : > { %v484_v32 = vadd.f32 %v867_v0, %v483_v25  ;;  %v363_v36 = vmax.f32 %v347_v22, 1.0  ;;  %v507_v16 = vsel %vm1167_vm13, %v506_v11, %v502_v31  ;;  %vm472_vm3 = vweird.f32 %v869_v23 }
  0x32   : > { %v871_v37 = vpop.eup %870  ;;  %v468_v38 = vsub.f32 1.0, %v467_v28  ;;  %874 = vrcp.f32 %v1186_v18  ;;  %vm1210_vm4 = vcmp.eq.f32.partialorder %v475_v26, 8.507059e+37  ;;  %v478_v41 = vor.u32 1.1754944e-38, %v477_v15  ;;  %vm1224_vm7 = vmor %vm471_vm2, %vm472_vm3 }
  0x33   : > { %v537_v42 = vmul.f32 %v871_v37, %v1156_v3  ;;  %vm541_vm5 = vweird.f32 %v1156_v3  ;;  %vm1218_vm6 = vcmp.eq.f32.partialorder %v545_v29, 8.507059e+37  ;;  %vm542_vm8 = vweird.f32 %v871_v37 }
  0x34   : > { %801 = vmatmul.msk.f32.gmra.mxu0 %vm220_vm0, %v199_v57  ;;  %805 = vmatmul.msk.f32.gmra.mxu1 %vm220_vm0, %v203_v55  ;;  %v469_v43 = vmul.f32 %v869_v23, %v468_v38  ;;  %v548_v47 = vor.u32 1.1754944e-38, %v547_v30  ;;  %v1228_v48 = vmin.f32 %v364_v35, 4.0  ;;  %vm527_vm9 = vweird.f32 %v1184_v20 }
  0x35   : > { %809 = vmatmul.msk.f32.gmra.mxu2 %vm220_vm0, %v207_v61  ;;  %813 = vmatmul.msk.f32.gmra.mxu3 %vm220_vm0, %v211_v2  ;;  %vm1195_vm0 = vmor %vm485_vm11, %vm486_vm14  ;;  %v538_v46 = vsub.f32 1.0, %v537_v42  ;;  %v531_v53 = vand.u32 2147483647, %v1184_v20  ;;  %v1233_v54 = vmin.f32 %v363_v36, 4.0  ;;  %v533_v57 = vand.u32 2147483648, %v1184_v20 }
  0x36   : > { %648 = vperm.xlu2 %851, %v507_v16   ;;  %v488_v33 = vsel %vm1195_vm0, %v867_v0, %v484_v32  ;;  %v873_v50 = vpop.eup %872  ;;  %v470_v52 = vadd.f32 %v869_v23, %v469_v43  ;;  %vm513_vm10 = vweird.f32 %v1186_v18  ;;  %vm1244_vm11 = vmor %vm541_vm5, %vm542_vm8  ;;  %876 = vrcp.f32 %v1228_v48 }
  0x37   : > { %v493_v34 = vsel %vm1172_vm15, %v492_v19, %v488_v33  ;;  %v539_v51 = vmul.f32 %v871_v37, %v538_v46  ;;  %v523_v56 = vmul.f32 %v873_v50, %v1184_v20  ;;  %vm528_vm12 = vweird.f32 %v873_v50 }
  0x38   : > { %643 = vperm.xlu1 %850, %v493_v34   ;;  %v875_v59 = vpop.eup %874  ;;  %v474_v60 = vsel %vm1224_vm7, %v869_v23, %v470_v52  ;;  %v362_v55 = vmax.f32 %v346_v49, 1.0  ;;  %v517_v1 = vand.u32 2147483647, %v1186_v18  ;;  %v519_v2 = vand.u32 2147483648, %v1186_v18  ;;  %vm1262_vm14 = vmor %vm527_vm9, %vm528_vm12 }
  0x39   : > { %v479_v61 = vsel %vm1210_vm4, %v478_v41, %v474_v60  ;;  %v540_v62 = vadd.f32 %v871_v37, %v539_v51  ;;  %v524_v63 = vsub.f32 1.0, %v523_v56  ;;  %v509_v0 = vmul.f32 %v875_v59, %v1186_v18 }
  0x3a   : > { %638 = vperm.xlu0 %849, %v479_v61   ;;  %878 = vrcp.f32 %v1233_v54  ;;  %v365_v3 = vmax.f32 %v349_v58, 1.0  ;;  %vm514_vm13 = vweird.f32 %v875_v59  ;;  %v534_v9 = vor.u32 1.1754944e-38, %v533_v57 }
  0x3b   : > { %v544_v4 = vsel %vm1244_vm11, %v871_v37, %v540_v62  ;;  %v525_v5 = vmul.f32 %v873_v50, %v524_v63  ;;  %v510_v6 = vsub.f32 1.0, %v509_v0  ;;  %vm532_vm15 = vcmp.eq.f32.partialorder %v531_v53, 8.507059e+37  ;;  %vm1268_vm1 = vmor %vm513_vm10, %vm514_vm13 }
  0x3c   : > { %v549_v7 = vsel %vm1218_vm6, %v548_v47, %v544_v4  ;;  %v378_v12 = vmin.f32 %v362_v55, 4.0  ;;  %v877_v13 = vpop.eup %876  ;;  %vm1272_vm2 = vcmp.eq.f32.partialorder %v517_v1, 8.507059e+37  ;;  %v520_v19 = vor.u32 1.1754944e-38, %v519_v2 }
  0x3d   : > { %v526_v10 = vadd.f32 %v873_v50, %v525_v5  ;;  %v511_v11 = vmul.f32 %v875_v59, %v510_v6  ;;  %v1276_v20 = vmin.f32 %v365_v3, 4.0  ;;  %v579_v23 = vmul.f32 %v877_v13, %v1228_v48 }
  0x3e   : > { %663 = vperm.xlu2 %851, %v549_v7   ;;  %vm583_vm0 = vweird.f32 %v1228_v48  ;;  %v587_v25 = vand.u32 2147483647, %v1228_v48  ;;  %v589_v26 = vand.u32 2147483648, %v1228_v48  ;;  %880 = vrcp.f32 %v378_v12 }
  0x3f   : > { %v530_v21 = vsel %vm1262_vm14, %v873_v50, %v526_v10  ;;  %v512_v22 = vadd.f32 %v875_v59, %v511_v11  ;;  %v580_v27 = vsub.f32 1.0, %v579_v23  ;;  %vm584_vm3 = vweird.f32 %v877_v13 }
  0x40   : > { %v879_v18 = vpop.eup %878  ;;  %v535_v24 = vsel %vm532_vm15, %v534_v9, %v530_v21  ;;  %vm569_vm4 = vweird.f32 %v1233_v54  ;;  %v575_v30 = vand.u32 2147483648, %v1233_v54  ;;  %882 = vrcp.f32 %v1276_v20  ;;  %vm585_vm6 = vmor %vm583_vm0, %vm584_vm3 }
  0x41   : > { %658 = vperm.xlu1 %850, %v535_v24   ;;  %v516_v15 = vsel %vm1268_vm1, %v875_v59, %v512_v22  ;;  %v565_v28 = vmul.f32 %v879_v18, %v1233_v54  ;;  %v581_v31 = vmul.f32 %v877_v13, %v580_v27  ;;  %vm570_vm5 = vweird.f32 %v879_v18 }
  0x42   : > { %v521_v29 = vsel %vm1272_vm2, %v520_v19, %v516_v15  ;;  %v573_v35 = vand.u32 2147483647, %v1233_v54  ;;  %v590_v36 = vor.u32 1.1754944e-38, %v589_v26  ;;  %vm588_vm7 = vcmp.eq.f32.partialorder %v587_v25, 8.507059e+37  ;;  %vm1295_vm8 = vmor %vm569_vm4, %vm570_vm5 }
  0x43   : > { %653 = vperm.xlu0 %849, %v521_v29   ;;  %v566_v32 = vsub.f32 1.0, %v565_v28  ;;  %v582_v37 = vadd.f32 %v877_v13, %v581_v31  ;;  %v576_v40 = vor.u32 1.1754944e-38, %v575_v30  ;;  %vm555_vm10 = vweird.f32 %v378_v12 }
  0x44   : > { %v881_v38 = vpop.eup %880  ;;  %vm574_vm9 = vcmp.eq.f32.partialorder %v573_v35, 8.507059e+37  ;;  %v559_v45 = vand.u32 2147483647, %v378_v12  ;;  %v561_v46 = vand.u32 2147483648, %v378_v12  ;;  %vm597_vm13 = vweird.f32 %v1276_v20 }
  0x45   : > { %v567_v16 = vmul.f32 %v879_v18, %v566_v32  ;;  %v586_v41 = vsel %vm585_vm6, %v877_v13, %v582_v37  ;;  %v551_v34 = vmul.f32 %v881_v38, %v378_v12  ;;  %vm556_vm11 = vweird.f32 %v881_v38 }
  0x46   : > { %v883_v43 = vpop.eup %882  ;;  %v591_v44 = vsel %vm588_vm7, %v590_v36, %v586_v41  ;;  %vm557_vm12 = vmor %vm555_vm10, %vm556_vm11  ;;  %v562_v54 = vor.u32 1.1754944e-38, %v561_v46  ;;  %vm560_vm14 = vcmp.eq.f32.partialorder %v559_v45, 8.507059e+37  ;;  %v603_v57 = vand.u32 2147483648, %v1276_v20 }
  0x47   : > { %v568_v42 = vadd.f32 %v879_v18, %v567_v16  ;;  %678 = vperm.xlu2 %851, %v591_v44   ;;  %v552_v48 = vsub.f32 1.0, %v551_v34  ;;  %v593_v49 = vmul.f32 %v883_v43, %v1276_v20  ;;  %vm598_vm15 = vweird.f32 %v883_v43 }
  0x48   : > { %v601_v60 = vand.u32 2147483647, %v1276_v20  ;;  %vm599_vm1 = vmor %vm597_vm13, %vm598_vm15  ;;  %v604_v55 = vor.u32 1.1754944e-38, %v603_v57  ;;  %vm702_vm0 = vcmask 64512  }
  0x49   : > { %v572_v47 = vsel %vm1295_vm8, %v879_v18, %v568_v42  ;;  %v553_v52 = vmul.f32 %v881_v38, %v552_v48  ;;  %v594_v53 = vsub.f32 1.0, %v593_v49 }
  0x4a   : > { %v577_v50 = vsel %vm574_vm9, %v576_v40, %v572_v47  ;;  %vm602_vm2 = vcmp.eq.f32.partialorder %v601_v60, 8.507059e+37 }
  0x4b   : > { %673 = vperm.xlu1 %850, %v577_v50   ;;  %v554_v51 = vadd.f32 %v881_v38, %v553_v52  ;;  %v595_v56 = vmul.f32 %v883_v43, %v594_v53 }
  0x4d   : > { %v558_v58 = vsel %vm557_vm12, %v881_v38, %v554_v51  ;;  %v596_v59 = vadd.f32 %v883_v43, %v595_v56 }
  0x4e   : > { %v563_v39 = vsel %vm560_vm14, %v562_v54, %v558_v58 }
  0x4f   : > { %668 = vperm.xlu0 %849, %v563_v39   ;;  %v600_v61 = vsel %vm599_vm1, %v883_v43, %v596_v59 }
  0x50   : > { %v605_v62 = vsel %vm602_vm2, %v604_v55, %v600_v61 }
  0x57   : > { %683 = vperm.xlu0 %849, %v605_v62  }
  0x80   : > { %v629_v63 = vpop.permute.xlu2 %628 }
  0x88   : > { %v634_v0 = vpop.permute.xlu2 %633 }
  0x90   : > { %v649_v4 = vpop.permute.xlu2 %648 }
  0x98   : > { %v619_v5 = vpop.permute.xlu1 %618  ;;  %v664_v14 = vpop.permute.xlu2 %663 }
  0x99   : > { %v286_v1 = vpop.f32.mrf.mxu0  ;;  %v298_v2 = vpop.f32.mrf.mxu1 }
  0x9a   : > { %v690_v3 = vmul.f32 %v629_v63, %v298_v2  ;;  %v609_v6 = vpop.permute.xlu0 %608 }
  0x9b   : > { %v686_v7 = vmul.f32 %v609_v6, %v286_v1 }
  0x9c   : > { %707 = vst.msk [vmem:[%s1309_s14 + $0x20] sm:$0xff] %vm702_vm0, %v690_v3 }
  0x9d   : > { %703 = vst.msk [vmem:[%s1309_s14] sm:$0xff] %vm702_vm0, %v686_v7 }
  0xa0   : > { %v310_v8 = vpop.f32.mrf.mxu2  ;;  %v322_v10 = vpop.f32.mrf.mxu3 }
  0xa1   : > { %v694_v9 = vmul.f32 %v649_v4, %v310_v8  ;;  %v289_v11 = vpop.f32.mrf.mxu0  ;;  %v301_v12 = vpop.f32.mrf.mxu1 }
  0xa2   : > { %v691_v13 = vmul.f32 %v634_v0, %v301_v12  ;;  %v624_v17 = vpop.permute.xlu1 %623  ;;  %v614_v19 = vpop.permute.xlu0 %613 }
  0xa3   : > { %711 = vst.msk [vmem:[%s1309_s14 + $0x40] sm:$0xff] %vm702_vm0, %v694_v9  ;;  %v687_v21 = vmul.f32 %v614_v19, %v289_v11  ;;  %v679_v25 = vpop.permute.xlu2 %678 }
  0xa4   : > { %708 = vst.msk [vmem:[%s1309_s14 + $0x28] sm:$0xff] %vm702_vm0, %v691_v13 }
  0xa5   : > { %704 = vst.msk [vmem:[%s1309_s14 + $0x8] sm:$0xff] %vm702_vm0, %v687_v21 }
  0xa8   : > { %v313_v20 = vpop.f32.mrf.mxu2  ;;  %v325_v22 = vpop.f32.mrf.mxu3 }
  0xa9   : > { %v292_v23 = vpop.f32.mrf.mxu0  ;;  %v304_v24 = vpop.f32.mrf.mxu1 }
  0xaa   : > { %v688_v18 = vmul.f32 %v619_v5, %v292_v23  ;;  %v644_v28 = vpop.permute.xlu1 %643 }
  0xac   : > { %705 = vst.msk [vmem:[%s1309_s14 + $0x10] sm:$0xff] %vm702_vm0, %v688_v18  ;;  %v639_v35 = vpop.permute.xlu0 %638 }
  0xad   : > { %v692_v36 = vmul.f32 %v639_v35, %v304_v24 }
  0xaf   : > { %709 = vst.msk [vmem:[%s1309_s14 + $0x30] sm:$0xff] %vm702_vm0, %v692_v36 }
  0xb0   : > { %v316_v26 = vpop.f32.mrf.mxu2  ;;  %v328_v15 = vpop.f32.mrf.mxu3 }
  0xb1   : > { %v295_v27 = vpop.f32.mrf.mxu0  ;;  %v700_v29 = vmul.f32 %v679_v25, %v328_v15  ;;  %v307_v31 = vpop.f32.mrf.mxu1 }
  0xb2   : > { %v689_v30 = vmul.f32 %v624_v17, %v295_v27  ;;  %v693_v32 = vmul.f32 %v644_v28, %v307_v31 }
  0xb3   : > { %717 = vst.msk [vmem:[%s1309_s14 + $0x70] sm:$0xff] %vm702_vm0, %v700_v29  ;;  %v659_v38 = vpop.permute.xlu1 %658 }
  0xb4   : > { %706 = vst.msk [vmem:[%s1309_s14 + $0x18] sm:$0xff] %vm702_vm0, %v689_v30  ;;  %v696_v33 = vmul.f32 %v659_v38, %v316_v26 }
  0xb5   : > { %710 = vst.msk [vmem:[%s1309_s14 + $0x38] sm:$0xff] %vm702_vm0, %v693_v32  ;;  %v654_v40 = vpop.permute.xlu0 %653 }
  0xb6   : > { %713 = vst.msk [vmem:[%s1309_s14 + $0x50] sm:$0xff] %vm702_vm0, %v696_v33  ;;  %v695_v41 = vmul.f32 %v654_v40, %v313_v20 }
  0xb8   : > { %v319_v37 = vpop.f32.mrf.mxu2  ;;  %712 = vst.msk [vmem:[%s1309_s14 + $0x48] sm:$0xff] %vm702_vm0, %v695_v41  ;;  %v331_v45 = vpop.f32.mrf.mxu3 }
  0xb9   : > { %v697_v16 = vmul.f32 %v664_v14, %v319_v37 }
  0xbb   : > { %714 = vst.msk [vmem:[%s1309_s14 + $0x58] sm:$0xff] %vm702_vm0, %v697_v16 }
  0xbd   : > { %v674_v42 = vpop.permute.xlu1 %673 }
  0xbe   : > { %v699_v34 = vmul.f32 %v674_v42, %v325_v22 }
  0xc0   : > { %716 = vst.msk [vmem:[%s1309_s14 + $0x68] sm:$0xff] %vm702_vm0, %v699_v34 }
  0xc1   : > { %v669_v43 = vpop.permute.xlu0 %668 }
  0xc2   : > { %v698_v44 = vmul.f32 %v669_v43, %v322_v10 }
  0xc4   : > { %715 = vst.msk [vmem:[%s1309_s14 + $0x60] sm:$0xff] %vm702_vm0, %v698_v44 }
  0xc9   : > { %v684_v46 = vpop.permute.xlu0 %683 }
  0xca   : > { %v701_v47 = vmul.f32 %v684_v46, %v331_v45 }
  0xcc   : > { %718 = vst.msk [vmem:[%s1309_s14 + $0x78] sm:$0xff] %vm702_vm0, %v701_v47 }
  0xcd PF: > { %s13_s12 = sadd.s32 1, %s890_s12  }
  0xce   : > { %p10_p4 = scmp.ge.s32.totalorder %s13_s12, 6  }
  0xd0   :  { %12 = sbr.rel (!%p10_p4) target bundleno = 1 (0x1), region = 65 }

</bundles_post_ra>
